<compile_context>
chip_gen: v6e
topology: v6e:2x2x1
jax: 0.10.0
libtpu: 0.0.40
codegen_flags: <defaults>
</compile_context>

<pallas_src>
import jax
import jax.numpy as jnp
from jax.experimental import pallas as pl
from jax.experimental.pallas import tpu as pltpu


def gated_fusion_kernel(img_ref, aud_ref,
                        wi_ref, bi_ref,
                        wa_ref, ba_ref,
                        wf_ref, bf_ref,
                        out_ref,
                        comb_ref):
    """Grid = (batch_tiles, fusion_column_tiles).

    img_ref, aud_ref : (TB, D)       activation tiles (pipelined over batch)
    wi_ref, wa_ref   : (D, D)        resident gate weights (single-buffered)
    bi_ref, ba_ref   : (1, D)
    wf_ref           : (2D, TN)      fusion-weight column slab
    bf_ref           : (1, TN)
    out_ref          : (TB, TN)
    comb_ref         : (TB, 2D) f32  VMEM scratch holding [gated_img ; gated_aud]
    """
    D = img_ref.shape[1]
    tn = out_ref.shape[1]
    mm_dtype = wi_ref.dtype            # dtype fed to the MXU (f32 or bf16)
    j = pl.program_id(1)

    # Modality gates: computed once per batch tile (first column step) and
    # cached in VMEM scratch. All VPU/EUP math stays in f32 (v5e-safe).
    @pl.when(j == 0)
    def _():
        img = img_ref[...]
        aud = aud_ref[...]
        img_gate = jax.nn.sigmoid(
            jnp.dot(img.astype(mm_dtype), wi_ref[...],
                    preferred_element_type=jnp.float32)
            + bi_ref[...].astype(jnp.float32))
        aud_gate = jax.nn.sigmoid(
            jnp.dot(aud.astype(mm_dtype), wa_ref[...],
                    preferred_element_type=jnp.float32)
            + ba_ref[...].astype(jnp.float32))
        comb_ref[:, :D] = img.astype(jnp.float32) * img_gate
        comb_ref[:, D:] = aud.astype(jnp.float32) * aud_gate

    # Fusion gate for this column slab: one (TB,2D)x(2D,TN) MXU matmul against
    # the streamed weight slab; the concatenation is never materialized beyond
    # the comb scratch.
    comb = comb_ref[...]
    logits = (jnp.dot(comb.astype(mm_dtype), wf_ref[...],
                      preferred_element_type=jnp.float32)
              + bf_ref[...].astype(jnp.float32))
    fusion_gate = jax.nn.sigmoid(logits)

    col0 = pl.multiple_of(j * tn, 128)
    out_ref[...] = (comb_ref[:, pl.ds(col0, tn)] * fusion_gate).astype(out_ref.dtype)


def _choose_batch_tile(B):
    if B > 128:
        return 256                     # fill the 256-wide MXU pass on v6e/v7x
    return max(8, ((B + 7) // 8) * 8)  # single sublane-aligned tile for small B


def _vmem_bytes(tb, D, tn, w_itemsize, act_itemsize):
    nj = (2 * D) // tn
    wf_bufs = 1 if nj == 1 else 2
    weights = (2 * D * D + 2 * D) * w_itemsize          # wi, wa, bi, ba (Buffered(1))
    wf = wf_bufs * (2 * D * tn + tn) * w_itemsize       # wf + bf column slabs
    acts = 2 * (2 * tb * D) * act_itemsize              # img + aud, double-buffered
    outs = 2 * (tb * tn) * act_itemsize                 # out, double-buffered
    scratch = tb * 2 * D * 4                            # comb scratch (f32)
    return weights + wf + acts + outs + scratch


def _choose_fusion_col_tile(tb, D, w_itemsize, act_itemsize,
                            budget_bytes=40 * 1024 * 1024):
    # Keep the fusion weight fully resident when it fits the VMEM budget;
    # otherwise stream it in halved column slabs (>= 512, multiple of 128).
    tn = 2 * D
    while tn > 512 and _vmem_bytes(tb, D, tn, w_itemsize, act_itemsize) > budget_bytes:
        tn //= 2
    return tn


def gated_fusion(image_features, audio_features, params, *,
                 tb=None, tn=None, mxu_dtype=None):
    B, D = image_features.shape
    assert D % 128 == 0, "feature_dim must be a multiple of 128 (pad in caller)"
    out_dtype = image_features.dtype

    wi, wa, wf = params["wi"], params["wa"], params["wf"]
    bi, ba, bf = params["bi"], params["ba"], params["bf"]
    if mxu_dtype is not None:
        # bf16 weights: halves the weight HBM stream / VMEM residency; the MXU
        # still accumulates in f32 and all gating math stays f32.
        wi = wi.astype(mxu_dtype)
        wa = wa.astype(mxu_dtype)
        wf = wf.astype(mxu_dtype)
    w_itemsize = jnp.dtype(wi.dtype).itemsize
    act_itemsize = jnp.dtype(out_dtype).itemsize

    if tb is None:
        tb = _choose_batch_tile(B)
    B_pad = pl.cdiv(B, tb) * tb
    if B_pad != B:
        pad = ((0, B_pad - B), (0, 0))
        image_features = jnp.pad(image_features, pad)
        audio_features = jnp.pad(audio_features, pad)
    nb = B_pad // tb

    if tn is None:
        tn = _choose_fusion_col_tile(tb, D, w_itemsize, act_itemsize)
    assert (2 * D) % tn == 0 and tn % 128 == 0
    nj = (2 * D) // tn

    # Single-buffer everything whose block index never changes; double-buffer
    # the fusion-weight slabs only when they actually stream (nj > 1).
    resident = pl.Buffered(1)
    wf_mode = pl.Buffered(1) if nj == 1 else pl.Buffered(2)

    vmem_limit = int(_vmem_bytes(tb, D, tn, w_itemsize, act_itemsize) * 1.25) + (2 << 20)
    vmem_limit = min(max(vmem_limit, 16 << 20), 112 << 20)

    flops = 2 * B_pad * (2 * D * D + 4 * D * D)          # three linears
    transcendentals = B_pad * 4 * D                       # sigmoids (exp)
    wf_reads = 1 if nj == 1 else nb                       # resident vs re-streamed per batch tile
    bytes_accessed = (
        (2 * D * D + wf_reads * 4 * D * D + 4 * D) * w_itemsize
        + (2 * B_pad * D + B_pad * 2 * D) * act_itemsize)

    out = pl.pallas_call(
        gated_fusion_kernel,
        out_shape=jax.ShapeDtypeStruct((B_pad, 2 * D), out_dtype),
        grid=(nb, nj),
        in_specs=[
            pl.BlockSpec((tb, D), lambda b, j: (b, 0)),                              # image
            pl.BlockSpec((tb, D), lambda b, j: (b, 0)),                              # audio
            pl.BlockSpec((D, D), lambda b, j: (0, 0), pipeline_mode=resident),       # wi
            pl.BlockSpec((1, D), lambda b, j: (0, 0), pipeline_mode=resident),       # bi
            pl.BlockSpec((D, D), lambda b, j: (0, 0), pipeline_mode=resident),       # wa
            pl.BlockSpec((1, D), lambda b, j: (0, 0), pipeline_mode=resident),       # ba
            pl.BlockSpec((2 * D, tn), lambda b, j: (0, j), pipeline_mode=wf_mode),   # wf
            pl.BlockSpec((1, tn), lambda b, j: (0, j), pipeline_mode=wf_mode),       # bf
        ],
        out_specs=pl.BlockSpec((tb, tn), lambda b, j: (b, j)),
        scratch_shapes=[pltpu.VMEM((tb, 2 * D), jnp.float32)],
        compiler_params=pltpu.CompilerParams(
            dimension_semantics=("parallel", "arbitrary"),
            vmem_limit_bytes=vmem_limit),
        cost_estimate=pl.CostEstimate(
            flops=flops,
            transcendentals=transcendentals,
            bytes_accessed=bytes_accessed),
    )(image_features, audio_features, wi, bi, wa, ba, wf, bf)

    return out[:B] if B_pad != B else out


def init_params(key, feature_dim, dtype=jnp.float32):
    """Deterministic synthetic init matching torch.nn.Linear shapes.

    PyTorch stores Linear weights as (out, in); we store the transpose (in, out)
    so the kernel computes x @ W + b directly.
    """
    D = feature_dim
    k = jax.random.split(key, 6)
    bound1 = 1.0 / (D ** 0.5)
    bound2 = 1.0 / ((2 * D) ** 0.5)
    return {
        "wi": jax.random.uniform(k[0], (D, D), dtype, -bound1, bound1),
        "bi": jax.random.uniform(k[1], (1, D), dtype, -bound1, bound1),
        "wa": jax.random.uniform(k[2], (D, D), dtype, -bound1, bound1),
        "ba": jax.random.uniform(k[3], (1, D), dtype, -bound1, bound1),
        "wf": jax.random.uniform(k[4], (2 * D, 2 * D), dtype, -bound2, bound2),
        "bf": jax.random.uniform(k[5], (1, 2 * D), dtype, -bound2, bound2),
    }


def gated_fusion_ref(image_features, audio_features, params):
    """Pure-JAX reference mirroring the PyTorch forward exactly."""
    img_gate = jax.nn.sigmoid(image_features @ params["wi"] + params["bi"])
    aud_gate = jax.nn.sigmoid(audio_features @ params["wa"] + params["ba"])
    gated_img = image_features * img_gate
    gated_aud = audio_features * aud_gate
    combined = jnp.concatenate([gated_img, gated_aud], axis=1)
    fusion_gate = jax.nn.sigmoid(combined @ params["wf"] + params["bf"])
    return combined * fusion_gate


if __name__ == "__main__":
    B, D = 8, 128  # batch, feature_dim (lane-aligned)

    key = jax.random.PRNGKey(0)
    k_img, k_aud, k_params = jax.random.split(key, 3)

    image_features = jax.random.normal(k_img, (B, D), jnp.float32)
    audio_features = jax.random.normal(k_aud, (B, D), jnp.float32)
    params = init_params(k_params, D)

    ref = gated_fusion_ref(image_features, audio_features, params)

    # f32 path; tn=128 forces two fusion-column grid steps so the streamed-wf /
    # pl.when(j == 0) path is exercised even at this tiny shape.
    out = gated_fusion(image_features, audio_features, params, tn=128)
    out = jax.block_until_ready(out)
    assert out.shape == (B, 2 * D), out.shape
    assert jnp.allclose(out, ref, atol=2e-5, rtol=2e-5), "f32 mismatch vs reference"

    # bf16-weight MXU path (the weight-bandwidth-bound fast path); resident wf.
    out_bf16 = gated_fusion(image_features, audio_features, params,
                            mxu_dtype=jnp.bfloat16)
    out_bf16 = jax.block_until_ready(out_bf16)
    assert jnp.allclose(out_bf16, ref, atol=3e-2, rtol=3e-2), "bf16 mismatch vs reference"

    print("KERNEL_OK")
</pallas_src>

<mosaic_0001>
module attributes {stable_mosaic.version = 11 : i64} {
  func.func @gated_fusion_kernel(%arg0: i32, %arg1: i32, %arg2: memref<8x128xf32, #tpu.memory_space<vmem>>, %arg3: memref<8x128xf32, #tpu.memory_space<vmem>>, %arg4: memref<128x128xf32, #tpu.memory_space<vmem>>, %arg5: memref<1x128xf32, #tpu.memory_space<vmem>>, %arg6: memref<128x128xf32, #tpu.memory_space<vmem>>, %arg7: memref<1x128xf32, #tpu.memory_space<vmem>>, %arg8: memref<256x128xf32, #tpu.memory_space<vmem>>, %arg9: memref<1x128xf32, #tpu.memory_space<vmem>>, %arg10: memref<8x128xf32, #tpu.memory_space<vmem>>, %arg11: memref<8x256xf32, #tpu.memory_space<vmem>>) attributes {dimension_semantics = [#tpu.dimension_semantics<parallel>, #tpu.dimension_semantics<arbitrary>], iteration_bounds = array<i64: 1, 2>, scalar_prefetch = 0 : i64, scratch_operands = 1 : i64, tpu.core_type = #tpu.core_type<tc>, window_params = [{transform_indices = @transform_0, window_bounds = array<i64: 8, 128>}, {transform_indices = @transform_1, window_bounds = array<i64: 8, 128>}, {pipeline_mode = #tpu.pipeline_mode<synchronous>, transform_indices = @transform_2, window_bounds = array<i64: 128, 128>}, {pipeline_mode = #tpu.pipeline_mode<synchronous>, transform_indices = @transform_3, window_bounds = array<i64: 1, 128>}, {pipeline_mode = #tpu.pipeline_mode<synchronous>, transform_indices = @transform_4, window_bounds = array<i64: 128, 128>}, {pipeline_mode = #tpu.pipeline_mode<synchronous>, transform_indices = @transform_5, window_bounds = array<i64: 1, 128>}, {pipeline_mode = #tpu.pipeline_mode<double_buffered>, transform_indices = @transform_6, window_bounds = array<i64: 256, 128>}, {pipeline_mode = #tpu.pipeline_mode<double_buffered>, transform_indices = @transform_7, window_bounds = array<i64: 1, 128>}, {transform_indices = @transform_8, window_bounds = array<i64: 8, 128>}]} {
    %c0_i32 = arith.constant 0 : i32
    %0 = arith.cmpi eq, %arg1, %c0_i32 : i32
    %1 = arith.extui %0 : i1 to i32
    %c0_i32_0 = arith.constant 0 : i32
    %2 = arith.cmpi ne, %1, %c0_i32_0 : i32
    scf.if %2 {
      %c0_10 = arith.constant 0 : index
      %c0_11 = arith.constant 0 : index
      %20 = vector.load %arg2[%c0_10, %c0_11] : memref<8x128xf32, #tpu.memory_space<vmem>>, vector<8x128xf32>
      %c0_12 = arith.constant 0 : index
      %c0_13 = arith.constant 0 : index
      %21 = vector.load %arg3[%c0_12, %c0_13] : memref<8x128xf32, #tpu.memory_space<vmem>>, vector<8x128xf32>
      %c0_14 = arith.constant 0 : index
      %c0_15 = arith.constant 0 : index
      %22 = vector.load %arg4[%c0_14, %c0_15] : memref<128x128xf32, #tpu.memory_space<vmem>>, vector<128x128xf32>
      %cst_16 = arith.constant dense<0.000000e+00> : vector<8x128xf32>
      %23 = tpu.matmul %20, %22, %cst_16 {dimension_numbers = #tpu.dot_dimension_numbers<[1], [0], [0], [1], [0, 0, 1, 1], [], []>} : vector<8x128xf32>, vector<128x128xf32>, vector<8x128xf32> -> vector<8x128xf32>
      %c0_17 = arith.constant 0 : index
      %c0_18 = arith.constant 0 : index
      %24 = vector.load %arg5[%c0_17, %c0_18] : memref<1x128xf32, #tpu.memory_space<vmem>>, vector<1x128xf32>
      %25 = vector.broadcast %24 : vector<1x128xf32> to vector<8x128xf32>
      %26 = arith.addf %23, %25 : vector<8x128xf32>
      %27 = arith.negf %26 : vector<8x128xf32>
      %28 = math.exp %27 : vector<8x128xf32>
      %cst_19 = arith.constant 1.000000e+00 : f32
      %29 = vector.broadcast %cst_19 : f32 to vector<8x128xf32>
      %30 = arith.addf %29, %28 : vector<8x128xf32>
      %31 = arith.divf %29, %30 : vector<8x128xf32>
      %c0_20 = arith.constant 0 : index
      %c0_21 = arith.constant 0 : index
      %32 = vector.load %arg6[%c0_20, %c0_21] : memref<128x128xf32, #tpu.memory_space<vmem>>, vector<128x128xf32>
      %cst_22 = arith.constant dense<0.000000e+00> : vector<8x128xf32>
      %33 = tpu.matmul %21, %32, %cst_22 {dimension_numbers = #tpu.dot_dimension_numbers<[1], [0], [0], [1], [0, 0, 1, 1], [], []>} : vector<8x128xf32>, vector<128x128xf32>, vector<8x128xf32> -> vector<8x128xf32>
      %c0_23 = arith.constant 0 : index
      %c0_24 = arith.constant 0 : index
      %34 = vector.load %arg7[%c0_23, %c0_24] : memref<1x128xf32, #tpu.memory_space<vmem>>, vector<1x128xf32>
      %35 = vector.broadcast %34 : vector<1x128xf32> to vector<8x128xf32>
      %36 = arith.addf %33, %35 : vector<8x128xf32>
      %37 = arith.negf %36 : vector<8x128xf32>
      %38 = math.exp %37 : vector<8x128xf32>
      %cst_25 = arith.constant 1.000000e+00 : f32
      %39 = vector.broadcast %cst_25 : f32 to vector<8x128xf32>
      %40 = arith.addf %39, %38 : vector<8x128xf32>
      %41 = arith.divf %39, %40 : vector<8x128xf32>
      %42 = arith.mulf %20, %31 : vector<8x128xf32>
      %c0_26 = arith.constant 0 : index
      %c0_27 = arith.constant 0 : index
      %43 = vector.load %arg11[%c0_26, %c0_27] : memref<8x256xf32, #tpu.memory_space<vmem>>, vector<8x128xf32>
      tpu.vector_store %arg11[%c0_26, %c0_27], %42 {strides = array<i32>} : memref<8x256xf32, #tpu.memory_space<vmem>>, vector<8x128xf32>,
      %44 = arith.mulf %21, %41 : vector<8x128xf32>
      %c0_28 = arith.constant 0 : index
      %c128 = arith.constant 128 : index
      %45 = vector.load %arg11[%c0_28, %c128] : memref<8x256xf32, #tpu.memory_space<vmem>>, vector<8x128xf32>
      tpu.vector_store %arg11[%c0_28, %c128], %44 {strides = array<i32>} : memref<8x256xf32, #tpu.memory_space<vmem>>, vector<8x128xf32>,
    } else {
    }
    %c0 = arith.constant 0 : index
    %c0_1 = arith.constant 0 : index
    %3 = vector.load %arg11[%c0, %c0_1] : memref<8x256xf32, #tpu.memory_space<vmem>>, vector<8x256xf32>
    %c0_2 = arith.constant 0 : index
    %c0_3 = arith.constant 0 : index
    %4 = vector.load %arg8[%c0_2, %c0_3] : memref<256x128xf32, #tpu.memory_space<vmem>>, vector<256x128xf32>
    %cst = arith.constant dense<0.000000e+00> : vector<8x128xf32>
    %5 = tpu.matmul %3, %4, %cst {dimension_numbers = #tpu.dot_dimension_numbers<[1], [0], [0], [1], [0, 0, 1, 1], [], []>} : vector<8x256xf32>, vector<256x128xf32>, vector<8x128xf32> -> vector<8x128xf32>
    %c0_4 = arith.constant 0 : index
    %c0_5 = arith.constant 0 : index
    %6 = vector.load %arg9[%c0_4, %c0_5] : memref<1x128xf32, #tpu.memory_space<vmem>>, vector<1x128xf32>
    %7 = vector.broadcast %6 : vector<1x128xf32> to vector<8x128xf32>
    %8 = arith.addf %5, %7 : vector<8x128xf32>
    %9 = arith.negf %8 : vector<8x128xf32>
    %10 = math.exp %9 : vector<8x128xf32>
    %cst_6 = arith.constant 1.000000e+00 : f32
    %11 = vector.broadcast %cst_6 : f32 to vector<8x128xf32>
    %12 = arith.addf %11, %10 : vector<8x128xf32>
    %13 = arith.divf %11, %12 : vector<8x128xf32>
    %c128_i32 = arith.constant 128 : i32
    %14 = arith.muli %arg1, %c128_i32 : i32
    %15 = tpu.assume_multiple %14, 128 : i32
    %c0_7 = arith.constant 0 : index
    %16 = arith.index_cast %15 : i32 to index
    %17 = vector.load %arg11[%c0_7, %16] : memref<8x256xf32, #tpu.memory_space<vmem>>, vector<8x128xf32>
    %18 = arith.mulf %17, %13 : vector<8x128xf32>
    %c0_8 = arith.constant 0 : index
    %c0_9 = arith.constant 0 : index
    %19 = vector.load %arg10[%c0_8, %c0_9] : memref<8x128xf32, #tpu.memory_space<vmem>>, vector<8x128xf32>
    tpu.vector_store %arg10[%c0_8, %c0_9], %18 {strides = array<i32>} : memref<8x128xf32, #tpu.memory_space<vmem>>, vector<8x128xf32>,
    return
  }
  func.func @transform_0(%arg0: i32, %arg1: i32) -> (i32, i32) {
    %c0_i32 = arith.constant 0 : i32
    %c0_i32_0 = arith.constant 0 : i32
    return %arg0, %c0_i32 : i32, i32
  }
  func.func @transform_1(%arg0: i32, %arg1: i32) -> (i32, i32) {
    %c0_i32 = arith.constant 0 : i32
    %c0_i32_0 = arith.constant 0 : i32
    return %arg0, %c0_i32 : i32, i32
  }
  func.func @transform_2(%arg0: i32, %arg1: i32) -> (i32, i32) {
    %c0_i32 = arith.constant 0 : i32
    %c0_i32_0 = arith.constant 0 : i32
    %c0_i32_1 = arith.constant 0 : i32
    return %c0_i32, %c0_i32_0 : i32, i32
  }
  func.func @transform_3(%arg0: i32, %arg1: i32) -> (i32, i32) {
    %c0_i32 = arith.constant 0 : i32
    %c0_i32_0 = arith.constant 0 : i32
    %c0_i32_1 = arith.constant 0 : i32
    return %c0_i32, %c0_i32_0 : i32, i32
  }
  func.func @transform_4(%arg0: i32, %arg1: i32) -> (i32, i32) {
    %c0_i32 = arith.constant 0 : i32
    %c0_i32_0 = arith.constant 0 : i32
    %c0_i32_1 = arith.constant 0 : i32
    return %c0_i32, %c0_i32_0 : i32, i32
  }
  func.func @transform_5(%arg0: i32, %arg1: i32) -> (i32, i32) {
    %c0_i32 = arith.constant 0 : i32
    %c0_i32_0 = arith.constant 0 : i32
    %c0_i32_1 = arith.constant 0 : i32
    return %c0_i32, %c0_i32_0 : i32, i32
  }
  func.func @transform_6(%arg0: i32, %arg1: i32) -> (i32, i32) {
    %c0_i32 = arith.constant 0 : i32
    %c0_i32_0 = arith.constant 0 : i32
    return %c0_i32, %arg1 : i32, i32
  }
  func.func @transform_7(%arg0: i32, %arg1: i32) -> (i32, i32) {
    %c0_i32 = arith.constant 0 : i32
    %c0_i32_0 = arith.constant 0 : i32
    return %c0_i32, %arg1 : i32, i32
  }
  func.func @transform_8(%arg0: i32, %arg1: i32) -> (i32, i32) {
    %c0_i32 = arith.constant 0 : i32
    return %arg0, %arg1 : i32, i32
  }
}

</mosaic_0001>

<bundles_post_ra>
// kernel: tpu_custom_call.1
= control target key start
LH: loop header
LB: loop body
LE: loop exit
PB: predicated region body
PF: predicated region fallthrough
CT: control target
= control target key end

     0   :  { %s1768_s0 = inlined_call_operand.hbm [shape: f32[8,128], index: 0, kind: input, shape index: {}]   ;;  %s1769_s1 = inlined_call_operand.hbm [shape: f32[8,128], index: 1, kind: input, shape index: {}]   ;;  %s1770_s2 = inlined_call_operand.hbm [shape: f32[128,128], index: 2, kind: input, shape index: {}]   ;;  %s1771_s3 = inlined_call_operand.vmem [shape: f32[1,128], index: 3, kind: input, shape index: {}]   ;;  %s1772_s4 = inlined_call_operand.hbm [shape: f32[128,128], index: 4, kind: input, shape index: {}]   ;;  %s1773_s5 = inlined_call_operand.vmem [shape: f32[1,128], index: 5, kind: input, shape index: {}]   ;;  %s1774_s6 = inlined_call_operand.hbm [shape: f32[256,256], index: 6, kind: input, shape index: {}]   ;;  %s1775_s7 = inlined_call_operand.vmem [shape: f32[1,256], index: 7, kind: input, shape index: {}]   ;;  %s1776_s8 = inlined_call_operand.hbm [shape: f32[8,256], index: 8, kind: output, shape index: {}]  }
   0x1   :  { %1787 = sst [smem:[#allocation20_spill]] %s1768_s0 }
   0x2   :  { %1788 = sst [smem:[#allocation21_spill]] %s1769_s1 }
   0x3   :  { %1789 = sst [smem:[#allocation22_spill]] %s1770_s2 }
   0x4   :  { %1790 = sst [smem:[#allocation23_spill]] %s1776_s8 }
   0x5   :  { %13 = vsyncpa [#allocation4], 0 }
   0x6   :  { %14 = vsyncpa [#allocation7], 0 }
   0x7   :  { %15 = vsyncpa [#allocation10], 0 }
   0x8   :  { %16 = vsyncpa [#allocation5], 0 }
   0x9   :  { %18 = vsyncpa [#allocation5 + $0x1], 0  ;;  %s1470_s27 = smov 0   ;;  %s1472_s28 = smov 0  }
   0xa   :  { %s1474_s29 = smov 0   ;;  %s1476_s30 = smov 0  }
   0xb   :  { %s1478_s9 = smov 0   ;;  %s1480_s10 = smov 0  }
   0xc LB: > { %1791 = sst [smem:[#allocation18_spill]] %s1392_s27  ;;  %s1501_s11 = sadd.s32 4294967295, %s1412_s10   ;;  %s1412_s10 = sphi %s1480_s10, %s24_s10   ;;  %s1408_s9 = sphi %s1478_s9, %s1824_s9   ;;  %s1404_s30 = sphi %s1476_s30, %s1823_s30   ;;  %s1400_s29 = sphi %s1474_s29, %s1822_s29   ;;  %s1396_s28 = sphi %s1472_s28, %s1821_s28   ;;  %s1392_s27 = sphi %s1470_s27, %s1820_s27  }
   0xd   : > { %s900_s12 = sadd.s32 4294967294, %s1412_s10   ;;  %p186_p0 = scmp.ne.s32.totalorder %s1400_s29, %s1396_s28 }
   0xe   : > { %p187_p1 = scmp.eq.s32.totalorder %s1412_s10, 0  ;;  %p192_p2 = scmp.ne.s32.totalorder %s1396_s28, %s1392_s27 }
   0xf   : > { %p1777_p3 = scmp.eq.s32.totalorder %s1501_s11, 0  ;;  %p244_p5 = scmp.eq.s32.totalorder %s1501_s11, 1 }
  0x10   : > { %p1510_p4 = por %p187_p1, %p186_p0  ;;  %p250_p7 = scmp.eq.s32.totalorder %s900_s12, 1 }
  0x11   : > { %p1517_p6 = por %p1777_p3, %p192_p2  ;;  %p1521_p8 = por %p244_p5, %p186_p0 }
  0x12   : > { %p901_p9 = scmp.ge.s32.totalorder %s1412_s10, 1  ;;  %p1526_p10 = por %p250_p7, %p192_p2 }
  0x13   : > { %s1793_s14 = scalar_select %p1517_p6, 1, 0 }
  0x14   : > { %s1794_s15 = scalar_select %p1521_p8, 1, 0 }
  0x15   : > { %s1795_s16 = scalar_select %p1526_p10, 1, 0 }
  0x16   : > { %p257_p11 = scmp.lt.s32.totalorder %s1412_s10, 3  ;;  %s1414_s18 = smov [#allocation3]  }
  0x17   : > { %1796 = sst [smem:[#allocation19_spill]] %s1795_s16  ;;  %s272_s19 = sshll.u32 %s1414_s18, 4  ;;  %s273_s19 = int_to_ptr.vmem [resolvable:$true] %s272_s19 }
  0x18   : > { %p1531_p12 = pnand %p901_p9, %p257_p11  ;;  %p1113_p1 = scmp.lt.s32.totalorder %s1412_s10, 2 }
  0x19   : > { %s1415_s22 = smov [#allocation6]   ;;  %s1416_s24 = smov [#allocation8]  }
  0x1a   : > { %s1797_s17 = scalar_select %p1531_p12, 1, 0 }
  0x1b   : > { %p1088_p0 = pneg %p1531_p12  ;;  %p1547_p2 = pnand %p1113_p1, %p1510_p4 }
  0x1c   : > { %s285_s23 = sshll.u32 %s1415_s22, 4  ;;  %s295_s25 = sshll.u32 %s1416_s24, 4  ;;  %s286_s23 = int_to_ptr.vmem [resolvable:$true] %s285_s23  ;;  %s296_s25 = int_to_ptr.vmem [resolvable:$true] %s295_s25 }
  0x1d   : > { %p1541_p5 = pnand %p1088_p0, %p1777_p3  ;;  %s1199_s26 = scalar_lea.vmem %s273_s19, 128 }
  0x1e   : > { %s1799_s21 = scalar_select %p1547_p2, 1, 0 }
  0x1f   : > { %p1190_p7 = pneg %p1541_p5  ;;  %p1200_p9 = scmp.ne.s32.totalorder %s273_s19, %s1199_s26 }
  0x20   : > { %p1207_p13 = scmp.lt.s32.totalorder %s273_s19, %s273_s19  ;;  %p1208_p3 = scmp.lt.s32.totalorder %s1199_s26, %s1199_s26 }
  0x21   : > { %p1202_p11 = pnand %p1200_p9, %p1190_p7 }
  0x22   : > { %p1209_p10 = por %p1208_p3, %p1207_p13 }
  0x23   : > { %p1203_p0 = pneg %p1202_p11 }
  0x25   : > { %p1210_p8 = pnand %p1209_p10, %p1203_p0 }
  0x27   : > { %1213 = shalt.err (!%p1210_p8)
}
  0x28   : > { %s1800_s0 = sld [smem:[#allocation20_spill]]  ;;  %s1225_s18 = scalar_lea.vmem %s286_s23, 128 }
  0x29   : > { %p1226_p4 = scmp.ne.s32.totalorder %s286_s23, %s1225_s18  ;;  %p1233_p11 = scmp.lt.s32.totalorder %s286_s23, %s286_s23 }
  0x2a   : > { %p1234_p6 = scmp.lt.s32.totalorder %s1225_s18, %s1225_s18 }
  0x2b   : > { %p1228_p1 = pnand %p1226_p4, %p1190_p7 }
  0x2c   : > { %p1235_p3 = por %p1234_p6, %p1233_p11 }
  0x2d   : > { %p1229_p9 = pneg %p1228_p1 }
  0x2e   : > { %1091 = dma.hbm_to_vmem [thread:$0]  (!%p1541_p5), %s1800_s0, 128, %s273_s19, [#allocation4]  }
  0x2f   : > { %p1236_p10 = pnand %p1235_p3, %p1229_p9 }
  0x31   : > { %1239 = shalt.err (!%p1236_p10)
}
  0x32   : > { %s1801_s1 = sld [smem:[#allocation21_spill]]  ;;  %s1251_s19 = scalar_lea.vmem %s296_s25, 2048 }
  0x33   : > { %p1252_p8 = scmp.ne.s32.totalorder %s296_s25, %s1251_s19  ;;  %p1259_p4 = scmp.lt.s32.totalorder %s296_s25, %s296_s25 }
  0x34   : > { %p1260_p1 = scmp.lt.s32.totalorder %s1251_s19, %s1251_s19 }
  0x35   : > { %p1254_p13 = pnand %p1252_p8, %p1190_p7 }
  0x36   : > { %p1261_p12 = por %p1260_p1, %p1259_p4 }
  0x37   : > { %p1255_p0 = pneg %p1254_p13 }
  0x38   : > { %1094 = dma.hbm_to_vmem [thread:$0]  (!%p1541_p5), %s1801_s1, 128, %s286_s23, [#allocation7]  }
  0x39   : > { %p1262_p2 = pnand %p1261_p12, %p1255_p0 }
  0x3b   : > { %1265 = shalt.err (!%p1262_p2)
}
  0x3c   : > { %s1785_s26 = smov 128   ;;  %s1786_s12 = smov 8  }
  0x3d   : > { %s1802_s2 = sld [smem:[#allocation22_spill]]  ;;  %s1419_s18 = smov [#allocation9]  }
  0x3e   : > { %s311_s22 = sshll.u32 %s1419_s18, 4  ;;  %s33_s24 = sadd.s32 1, %s1408_s9  ;;  %s312_s22 = int_to_ptr.vmem [resolvable:$true] %s311_s22 }
  0x3f   : > { %s1277_s19 = scalar_lea.vmem %s312_s22, 2048  ;;  %p1285_p9 = scmp.lt.s32.totalorder %s312_s22, %s312_s22 }
  0x40   : > { %p1278_p6 = scmp.ne.s32.totalorder %s312_s22, %s1277_s19  ;;  %p1286_p11 = scmp.lt.s32.totalorder %s1277_s19, %s1277_s19 }
  0x42   : > { %p1280_p12 = pnand %p1278_p6, %p1190_p7  ;;  %p1287_p3 = por %p1286_p11, %p1285_p9 }
  0x43   : > { %1097 = dma.hbm_to_vmem [thread:$0]  (!%p1541_p5), %s1802_s2, 2048, %s296_s25, [#allocation7], %s1785_s26, %s1785_s26, %s1786_s12  }
  0x44   : > { %p1281_p2 = pneg %p1280_p12 }
  0x46   : > { %p1288_p10 = pnand %p1287_p3, %p1281_p2 }
  0x48   : > { %1291 = shalt.err (!%p1288_p10)
}
  0x49   : > { %1100 = dma.hbm_to_vmem [thread:$0]  (!%p1541_p5), %s1772_s4, 2048, %s312_s22, [#allocation10], %s1785_s26, %s1785_s26, %s1786_s12  }
  0x4a   : > { %p34_p7 = scmp.ge.s32.totalorder %s33_s24, 2  ;;  %s179_s13 = sadd.s32 1, %s1400_s29 }
  0x4b   : > { %s328_s18 = sand.u32 1, %s1412_s10   ;;  %s330_s19 = sand.u32 1, %s1400_s29  }
  0x4c   : > { %s1826_s24 = smov (%p34_p7, %s33_s24), 0  ;;  %s907_s20 = sshll.u32 %s330_s19, 8 }
  0x4d   : > { %s176_s0 = ssub.s32 %s1408_s9, %s1826_s24  ;;  %s908_s1 = sshll.u32 %s1408_s9, 7 }
  0x4e   : > { %p177_p8 = scmp.eq.s32.totalorder %s176_s0, 0  ;;  %s337_s2 = scalar_lea.hbm %s1774_s6, %s908_s1 }
  0x4f   : > { %s332_s16 = scalar_lea.vmem [#allocation11], %s907_s20  ;;  %s329_s22 = scalar_lea.sflag [#allocation4], %s328_s18 }
  0x50   : > { %s338_s27 = sshll.u32 %s332_s16, 4  ;;  %p1803_p5 = scmp.ne.s32.totalorder %s1799_s21, 0  ;;  %s339_s27 = int_to_ptr.vmem [resolvable:$true] %s338_s27 }
  0x51   : > { %s1604_s8 = scalar_select %p177_p8, %s1400_s29, %s179_s13  }
  0x52   : > { %p1294_p13 = pneg %p1803_p5  ;;  %s1305_s26 = scalar_lea.vmem %s339_s27, 4096 }
  0x53   : > { %p1306_p0 = scmp.ne.s32.totalorder %s339_s27, %s1305_s26  ;;  %s1420_s19 = smov [#allocation11]  }
  0x54   : > { %s1310_s12 = sshll.u32 %s1420_s19, 4  ;;  %s1311_s12 = int_to_ptr.vmem [resolvable:$false] %s1310_s12 }
  0x55   : > { %p1308_p4 = pnand %p1306_p0, %p1294_p13  ;;  %s1312_s0 = scalar_lea.vmem %s1311_s12, 8192 }
  0x56   : > { %p1313_p6 = scmp.lt.s32.totalorder %s339_s27, %s1311_s12  ;;  %p1314_p12 = scmp.lt.s32.totalorder %s1312_s0, %s1305_s26 }
  0x57   : > { %p1309_p1 = pneg %p1308_p4 }
  0x58   : > { %p1315_p2 = por %p1314_p12, %p1313_p6 }
  0x5a   : > { %p1316_p9 = pnand %p1315_p2, %p1309_p1 }
  0x5c   : > { %1319 = shalt.err (!%p1316_p9)
}
  0x5d   : > { %s1421_s1 = smov 256   ;;  %s1804_s16 = smov 8  }
  0x5e   : > { %s1805_s13 = smov 128   ;;  %p1806_p11 = scmp.ne.s32.totalorder %s1797_s17, 0 }
  0x5f   : > { %1104 = dma.hbm_to_vmem [thread:$0]  (!%p1803_p5), %s337_s2, 4096, %s339_s27, %s329_s22, %s1421_s1, %s1805_s13, %s1804_s16  }
  0x60   : > { %356 = sbr.rel (%p1806_p11) target bundleno = 665 (0x299), region = 52  ;;  %p1807_p3 = scmp.eq.s32.totalorder (!%p1806_p11), %s1501_s11, 0 }
  0x65   : > { %1371 = dma.done.wait (%p1807_p3), [#allocation4], 128   ;;  %p1808_p10 = pmov %p1807_p3 }
  0x66   : > { %p1809_p7 = pmov %p1807_p3 }
  0x67   : > { %1373 = vsyncadd (%p1808_p10), [#allocation4], 4294967168 }
  0x68   : > { %1375 = dma.done.wait (%p1809_p7), [#allocation7], 2176   ;;  %p1810_p8 = pmov %p1807_p3 }
  0x69   : > { %p1811_p13 = pmov %p1807_p3 }
  0x6a   : > { %1377 = vsyncadd (%p1810_p8), [#allocation7], 4294965120 }
  0x6b   : > { %1379 = dma.done.wait (%p1811_p13), [#allocation10], 2048   ;;  %p1812_p5 = pmov %p1807_p3 }
  0x6c   : > { %s374_s2 = sand.u32 1, %s1501_s11   ;;  %s1628_s27 = sand.u32 1, %s1396_s28  }
  0x6d   : > { %1381 = vsyncadd (%p1812_p5), [#allocation10], 4294965248  ;;  %s914_s17 = sshll.u32 %s1628_s27, 8  ;;  %s375_s21 = scalar_lea.sflag [#allocation4], %s374_s2 }
  0x6e   : > { %s1631_s26 = scalar_lea.vmem [#allocation11], %s914_s17  ;;  %p1813_p0 = scmp.ne.s32.totalorder %s1793_s14, 0 }
  0x70   : > { %1383 = dma.done.wait (%p1813_p0), %s375_s21, 4096  }
  0x71   : > { %1385 = vsyncadd (%p1813_p0), %s375_s21, 4294963200  ;;  %s915_s12 = sshll.u32 %s1628_s27, 3  ;;  %p414_p4 = scmp.lt.s32.totalorder %s1404_s30, 1 }
  0x72   : > { %s1646_s23 = scalar_lea.vmem [#allocation12], %s915_s12  ;;  %p916_p1 = scmp.ne.s32.totalorder %s1404_s30, 0 }
  0x73   : > { %s1640_s18 = scalar_select %p414_p4, %s1404_s30, 1 }
  0x74   : > { %420 = sbr.rel (%p916_p1) target bundleno = 386 (0x182), region = 76 }
  0x75   : > { %s416_s25 = scalar_lea.vmem %s1775_s7, %s1640_s18 }
  0x79   : > { %v438_v0 = vld [vmem:[#allocation8 + $0x78] sm:$0xff]  ;;  %v1422_v2 = vmov 0.0   ;;  %v437_v3 = vld [vmem:[#allocation8 + $0x70] sm:$0xff]  ;;  %v436_v5 = vld [vmem:[#allocation8 + $0x68] sm:$0xff]  ;;  %vm1423_vm0 = vmmov 0  }
  0x7a   : > { %v537_v1 = vld [vmem:[#allocation9 + $0x78] sm:$0xff]  ;;  %998 = vmatprep.subr.mxu0 %v1422_v2  ;;  %1033 = vmatprep.subr.mxu1 %v1422_v2  ;;  %v536_v4 = vld [vmem:[#allocation9 + $0x70] sm:$0xff]  ;;  %v535_v6 = vld [vmem:[#allocation9 + $0x68] sm:$0xff] }
  0x7b   : > { %999 = vmatpush3.msra.mxu0 %v438_v0  ;;  %1034 = vmatpush3.msra.mxu1 %v537_v1  ;;  %v435_v7 = vld [vmem:[#allocation8 + $0x60] sm:$0xff]  ;;  %v434_v9 = vld [vmem:[#allocation8 + $0x58] sm:$0xff]  ;;  %v433_v11 = vld [vmem:[#allocation8 + $0x50] sm:$0xff] }
  0x7c   : > { %1000 = vmatprep.subr.mxu0 %v1422_v2  ;;  %1035 = vmatprep.subr.mxu1 %v1422_v2  ;;  %v534_v8 = vld [vmem:[#allocation9 + $0x60] sm:$0xff]  ;;  %v533_v10 = vld [vmem:[#allocation9 + $0x58] sm:$0xff]  ;;  %v532_v12 = vld [vmem:[#allocation9 + $0x50] sm:$0xff] }
  0x7d   : > { %1001 = vmatpush3.msra.mxu0 %v437_v3  ;;  %1036 = vmatpush3.msra.mxu1 %v536_v4  ;;  %v432_v13 = vld [vmem:[#allocation8 + $0x48] sm:$0xff]  ;;  %v431_v15 = vld [vmem:[#allocation8 + $0x40] sm:$0xff]  ;;  %v430_v17 = vld [vmem:[#allocation8 + $0x38] sm:$0xff] }
  0x7e   : > { %1002 = vmatprep.subr.mxu0 %v1422_v2  ;;  %1037 = vmatprep.subr.mxu1 %v1422_v2  ;;  %v531_v14 = vld [vmem:[#allocation9 + $0x48] sm:$0xff]  ;;  %v530_v16 = vld [vmem:[#allocation9 + $0x40] sm:$0xff]  ;;  %v529_v18 = vld [vmem:[#allocation9 + $0x38] sm:$0xff] }
  0x7f   : > { %1003 = vmatpush3.msra.mxu0 %v436_v5  ;;  %1038 = vmatpush3.msra.mxu1 %v535_v6  ;;  %v429_v19 = vld [vmem:[#allocation8 + $0x30] sm:$0xff]  ;;  %v428_v21 = vld [vmem:[#allocation8 + $0x28] sm:$0xff]  ;;  %v427_v23 = vld [vmem:[#allocation8 + $0x20] sm:$0xff] }
  0x80   : > { %1004 = vmatprep.subr.mxu0 %v1422_v2  ;;  %1039 = vmatprep.subr.mxu1 %v1422_v2  ;;  %v528_v20 = vld [vmem:[#allocation9 + $0x30] sm:$0xff]  ;;  %v527_v22 = vld [vmem:[#allocation9 + $0x28] sm:$0xff]  ;;  %v526_v24 = vld [vmem:[#allocation9 + $0x20] sm:$0xff] }
  0x81   : > { %1005 = vmatpush3.msra.mxu0 %v435_v7  ;;  %1040 = vmatpush3.msra.mxu1 %v534_v8  ;;  %v426_v25 = vld [vmem:[#allocation8 + $0x18] sm:$0xff]  ;;  %v425_v27 = vld [vmem:[#allocation8 + $0x10] sm:$0xff]  ;;  %v424_v29 = vld [vmem:[#allocation8 + $0x8] sm:$0xff] }
  0x82   : > { %1006 = vmatprep.subr.mxu0 %v1422_v2  ;;  %1041 = vmatprep.subr.mxu1 %v1422_v2  ;;  %v525_v26 = vld [vmem:[#allocation9 + $0x18] sm:$0xff]  ;;  %v524_v28 = vld [vmem:[#allocation9 + $0x10] sm:$0xff]  ;;  %v523_v30 = vld [vmem:[#allocation9 + $0x8] sm:$0xff] }
  0x83   : > { %1007 = vmatpush3.msra.mxu0 %v434_v9  ;;  %1042 = vmatpush3.msra.mxu1 %v533_v10  ;;  %v423_v31 = vld [vmem:[#allocation8] sm:$0xff]  ;;  %v421_v33 = vld [vmem:[#allocation3] sm:$0xff]  ;;  %v422_v34 = vld [vmem:[#allocation6] sm:$0xff] }
  0x84   : > { %1008 = vmatprep.subr.mxu0 %v1422_v2  ;;  %1043 = vmatprep.subr.mxu1 %v1422_v2  ;;  %v522_v32 = vld [vmem:[#allocation9] sm:$0xff] }
  0x85   : > { %1009 = vmatpush3.msra.mxu0 %v433_v11  ;;  %1044 = vmatpush3.msra.mxu1 %v532_v12  ;;  %v917_v35 = vld [vmem:[%s1771_s3] ss:$0 sm:$0xff] }
  0x86   : > { %1010 = vmatprep.subr.mxu0 %v1422_v2  ;;  %1045 = vmatprep.subr.mxu1 %v1422_v2  ;;  %v919_v36 = vld [vmem:[%s1773_s5] ss:$0 sm:$0xff] }
  0x87   : > { %1011 = vmatpush3.msra.mxu0 %v432_v13  ;;  %1046 = vmatpush3.msra.mxu1 %v531_v14 }
  0x88   : > { %1012 = vmatprep.subr.mxu0 %v1422_v2  ;;  %1047 = vmatprep.subr.mxu1 %v1422_v2 }
  0x89   : > { %1013 = vmatpush3.msra.mxu0 %v431_v15  ;;  %1048 = vmatpush3.msra.mxu1 %v530_v16 }
  0x8a   : > { %1014 = vmatprep.subr.mxu0 %v1422_v2  ;;  %1049 = vmatprep.subr.mxu1 %v1422_v2 }
  0x8b   : > { %1015 = vmatpush3.msra.mxu0 %v430_v17  ;;  %1050 = vmatpush3.msra.mxu1 %v529_v18 }
  0x8c   : > { %1016 = vmatprep.subr.mxu0 %v1422_v2  ;;  %1051 = vmatprep.subr.mxu1 %v1422_v2 }
  0x8d   : > { %1017 = vmatpush3.msra.mxu0 %v429_v19  ;;  %1052 = vmatpush3.msra.mxu1 %v528_v20 }
  0x8e   : > { %1018 = vmatprep.subr.mxu0 %v1422_v2  ;;  %1053 = vmatprep.subr.mxu1 %v1422_v2 }
  0x8f   : > { %1019 = vmatpush3.msra.mxu0 %v428_v21  ;;  %1054 = vmatpush3.msra.mxu1 %v527_v22 }
  0x90   : > { %1020 = vmatprep.subr.mxu0 %v1422_v2  ;;  %1055 = vmatprep.subr.mxu1 %v1422_v2 }
  0x91   : > { %1021 = vmatpush3.msra.mxu0 %v427_v23  ;;  %1056 = vmatpush3.msra.mxu1 %v526_v24 }
  0x92   : > { %1022 = vmatprep.subr.mxu0 %v1422_v2  ;;  %1057 = vmatprep.subr.mxu1 %v1422_v2 }
  0x93   : > { %1023 = vmatpush3.msra.mxu0 %v426_v25  ;;  %1058 = vmatpush3.msra.mxu1 %v525_v26 }
  0x94   : > { %1024 = vmatprep.subr.mxu0 %v1422_v2  ;;  %1059 = vmatprep.subr.mxu1 %v1422_v2 }
  0x95   : > { %1025 = vmatpush3.msra.mxu0 %v425_v27  ;;  %1060 = vmatpush3.msra.mxu1 %v524_v28 }
  0x96   : > { %1026 = vmatprep.subr.mxu0 %v1422_v2  ;;  %1061 = vmatprep.subr.mxu1 %v1422_v2 }
  0x97   : > { %1027 = vmatpush3.msra.mxu0 %v424_v29  ;;  %1062 = vmatpush3.msra.mxu1 %v523_v30 }
  0x98   : > { %1028 = vmatprep.subr.mxu0 %v1422_v2  ;;  %1063 = vmatprep.subr.mxu1 %v1422_v2 }
  0x99   : > { %1029 = vmatpush3.msra.mxu0 %v423_v31  ;;  %1030 = vmatprep.mubr.msk.f32.mxu0 %vm1423_vm0, %v1422_v2 }
  0x9a   : > { %1064 = vmatpush3.msra.mxu1 %v522_v32  ;;  %1065 = vmatprep.mubr.msk.f32.mxu1 %vm1423_vm0, %v1422_v2 }
  0x9b   : > { %1031 = vmatmul.mubr.f32.vlgmr.msra.gmra.mxu0 %v421_v33  ;;  %1066 = vmatmul.mubr.f32.vlgmr.msra.gmra.mxu1 %v422_v34 }
 0x15b   : > { %v512_v37 = vpop.f32.mrf.mxu0  ;;  %v611_v38 = vpop.f32.mrf.mxu1 }
 0x15c   : > { %v513_v39 = vadd.f32 %v917_v35, %v512_v37  ;;  %v612_v40 = vadd.f32 %v919_v36, %v611_v38 }
 0x15d   : > { %v1032_v41 = vpop.f32.mrf.mxu0  ;;  %v1067_v42 = vpop.f32.mrf.mxu1 }
 0x15e   : > { %v918_v43 = vmul.f32 -1.442695, %v513_v39  ;;  %v920_v44 = vmul.f32 -1.442695, %v612_v40 }
 0x160   : > { %1176 = vpow2.f32 %v918_v43 }
 0x161   : > { %1178 = vpow2.f32 %v920_v44 }
 0x16d   : > { %v1177_v45 = vpop.eup %1176 }
 0x16e   : > { %v1179_v46 = vpop.eup %1178  ;;  %v519_v47 = vadd.f32 1.0, %v1177_v45 }
 0x16f   : > { %v618_v48 = vadd.f32 1.0, %v1179_v46 }
 0x170   : > { %1180 = vrcp.f32 %v519_v47 }
 0x171   : > { %1182 = vrcp.f32 %v618_v48 }
 0x17d   : > { %v1181_v49 = vpop.eup %1180 }
 0x17e   : > { %v1183_v50 = vpop.eup %1182  ;;  %v621_v51 = vmul.f32 %v1181_v49, %v421_v33 }
 0x17f   : > { %v623_v52 = vmul.f32 %v1183_v50, %v422_v34 }
 0x180   : > { %622 = vst [vmem:[#allocation2] sm:$0xff] %v621_v51 }
 0x181   : > { %624 = vst [vmem:[#allocation2 + $0x8] sm:$0xff] %v623_v52 }
 0x182 PF: > { %v658_v53 = vld [vmem:[%s1631_s26 + $0xf8] sm:$0xff]  ;;  %v657_v55 = vld [vmem:[%s1631_s26 + $0xf0] sm:$0xff]  ;;  %v656_v57 = vld [vmem:[%s1631_s26 + $0xe8] sm:$0xff]  ;;  %s923_s13 = sshll.u32 %s1404_s30, 7  ;;  %s1814_s11 = sld [smem:[#allocation23_spill]] }
 0x183   : > { %v642_v54 = vld [vmem:[%s1631_s26 + $0x78] sm:$0xff]  ;;  %963 = vmatprep.subr.mxu0 %v658_v53  ;;  %v641_v56 = vld [vmem:[%s1631_s26 + $0x70] sm:$0xff]  ;;  %v640_v58 = vld [vmem:[%s1631_s26 + $0x68] sm:$0xff]  ;;  %s743_s2 = sshra.s32 %s923_s13, 7  ;;  %p1815_p12 = scmp.ne.s32.totalorder %s1794_s15, 0 }
 0x184   : > { %964 = vmatpush3.msra.mxu0 %v642_v54  ;;  %v655_v59 = vld [vmem:[%s1631_s26 + $0xe0] sm:$0xff]  ;;  %v654_v61 = vld [vmem:[%s1631_s26 + $0xd8] sm:$0xff]  ;;  %v653_v63 = vld [vmem:[%s1631_s26 + $0xd0] sm:$0xff]  ;;  %s924_s17 = sshll.u32 %s743_s2, 3  ;;  %s1424_s30 = smov [#allocation12]  }
 0x185   : > { %965 = vmatprep.subr.mxu0 %v657_v55  ;;  %v639_v60 = vld [vmem:[%s1631_s26 + $0x60] sm:$0xff]  ;;  %v638_v62 = vld [vmem:[%s1631_s26 + $0x58] sm:$0xff]  ;;  %v637_v0 = vld [vmem:[%s1631_s26 + $0x50] sm:$0xff]  ;;  %s746_s21 = scalar_lea.vmem [#allocation2], %s924_s17  ;;  %s1324_s22 = sshll.u32 %s1424_s30, 4  ;;  %s1325_s22 = int_to_ptr.vmem [resolvable:$false] %s1324_s22 }
 0x186   : > { %966 = vmatpush3.msra.mxu0 %v641_v56  ;;  %v652_v1 = vld [vmem:[%s1631_s26 + $0xc8] sm:$0xff]  ;;  %v651_v4 = vld [vmem:[%s1631_s26 + $0xc0] sm:$0xff]  ;;  %v650_v6 = vld [vmem:[%s1631_s26 + $0xb8] sm:$0xff]  ;;  %s1326_s19 = scalar_lea.vmem %s1325_s22, 256 }
 0x187   : > { %967 = vmatprep.subr.mxu0 %v656_v57  ;;  %v636_v3 = vld [vmem:[%s1631_s26 + $0x48] sm:$0xff]  ;;  %v635_v5 = vld [vmem:[%s1631_s26 + $0x40] sm:$0xff]  ;;  %v634_v7 = vld [vmem:[%s1631_s26 + $0x38] sm:$0xff] }
 0x188   : > { %968 = vmatpush3.msra.mxu0 %v640_v58  ;;  %v626_v2 = vld [vmem:[#allocation2 + $0x8] sm:$0xff]  ;;  %v649_v8 = vld [vmem:[%s1631_s26 + $0xb0] sm:$0xff]  ;;  %v647_v12 = vld [vmem:[%s1631_s26 + $0xa0] sm:$0xff]  ;;  %s764_s20 = scalar_lea.hbm %s1814_s11, %s923_s13 }
 0x189   : > { %969 = vmatprep.subr.mxu0 %v655_v59  ;;  %730 = vmatprep.mubr.f32.mxu0 %v626_v2  ;;  %v633_v9 = vld [vmem:[%s1631_s26 + $0x30] sm:$0xff]  ;;  %v648_v10 = vld [vmem:[%s1631_s26 + $0xa8] sm:$0xff]  ;;  %v631_v13 = vld [vmem:[%s1631_s26 + $0x20] sm:$0xff] }
 0x18a   : > { %970 = vmatpush3.msra.mxu0 %v639_v60  ;;  %v632_v11 = vld [vmem:[%s1631_s26 + $0x28] sm:$0xff]  ;;  %v646_v14 = vld [vmem:[%s1631_s26 + $0x98] sm:$0xff]  ;;  %v645_v16 = vld [vmem:[%s1631_s26 + $0x90] sm:$0xff] }
 0x18b   : > { %971 = vmatprep.subr.mxu0 %v654_v61  ;;  %v630_v15 = vld [vmem:[%s1631_s26 + $0x18] sm:$0xff]  ;;  %v629_v17 = vld [vmem:[%s1631_s26 + $0x10] sm:$0xff]  ;;  %v644_v18 = vld [vmem:[%s1631_s26 + $0x88] sm:$0xff] }
 0x18c   : > { %972 = vmatpush3.msra.mxu0 %v638_v62  ;;  %v628_v19 = vld [vmem:[%s1631_s26 + $0x8] sm:$0xff]  ;;  %v643_v20 = vld [vmem:[%s1631_s26 + $0x80] sm:$0xff] }
 0x18d   : > { %973 = vmatprep.subr.mxu0 %v653_v63  ;;  %v627_v21 = vld [vmem:[%s1631_s26] sm:$0xff]  ;;  %s766_s26 = sshll.u32 %s1646_s23, 4  ;;  %s767_s26 = int_to_ptr.vmem [resolvable:$true] %s766_s26 }
 0x18e   : > { %974 = vmatpush3.msra.mxu0 %v637_v0  ;;  %v625_v22 = vld [vmem:[#allocation2] sm:$0xff]  ;;  %s1320_s14 = scalar_lea.vmem %s767_s26, 128  ;;  %p1327_p11 = scmp.lt.s32.totalorder %s767_s26, %s1325_s22 }
 0x18f   : > { %975 = vmatprep.subr.mxu0 %v652_v1  ;;  %v921_v24 = vld [vmem:[%s416_s25] ss:$0 sm:$0xff]  ;;  %s751_s25 = scalar_lea.sflag [#allocation5], %s1628_s27  ;;  %p1321_p6 = scmp.ne.s32.totalorder %s767_s26, %s1320_s14 }
 0x190   : > { %976 = vmatpush3.msra.mxu0 %v636_v3  ;;  %v747_v31 = vld [vmem:[%s746_s21] sm:$0xff]  ;;  %p1328_p3 = scmp.lt.s32.totalorder %s1326_s19, %s1320_s14 }
 0x191   : > { %977 = vmatprep.subr.mxu0 %v651_v4  ;;  %p1322_p2 = pnand %p1321_p6, %p1815_p12 }
 0x192   : > { %978 = vmatpush3.msra.mxu0 %v635_v5  ;;  %p1329_p10 = por %p1328_p3, %p1327_p11 }
 0x193   : > { %979 = vmatprep.subr.mxu0 %v650_v6  ;;  %p1323_p9 = pneg %p1322_p2 }
 0x194   : > { %980 = vmatpush3.msra.mxu0 %v634_v7 }
 0x195   : > { %981 = vmatprep.subr.mxu0 %v649_v8  ;;  %p1330_p7 = pnand %p1329_p10, %p1323_p9 }
 0x196   : > { %982 = vmatpush3.msra.mxu0 %v633_v9 }
 0x197   : > { %983 = vmatprep.subr.mxu0 %v648_v10 }
 0x198   : > { %984 = vmatpush3.msra.mxu0 %v632_v11 }
 0x199   : > { %985 = vmatprep.subr.mxu0 %v647_v12 }
 0x19a   : > { %986 = vmatpush3.msra.mxu0 %v631_v13 }
 0x19b   : > { %987 = vmatprep.subr.mxu0 %v646_v14 }
 0x19c   : > { %988 = vmatpush3.msra.mxu0 %v630_v15 }
 0x19d   : > { %989 = vmatprep.subr.mxu0 %v645_v16 }
 0x19e   : > { %990 = vmatpush3.msra.mxu0 %v629_v17 }
 0x19f   : > { %991 = vmatprep.subr.mxu0 %v644_v18 }
 0x1a0   : > { %992 = vmatpush3.msra.mxu0 %v628_v19 }
 0x1a1   : > { %993 = vmatprep.subr.mxu0 %v643_v20 }
 0x1a2   : > { %994 = vmatpush3.msra.mxu0 %v627_v21 }
 0x1a3   : > { %731 = vmatmul.mubr.f32.vlgmr.msra.gmra.mxu0 %v625_v22 }
 0x263   : > { %v995_v23 = vpop.f32.mrf.mxu0 }
 0x265   : > { %v996_v25 = vpop.f32.mrf.mxu0 }
 0x266   : > { %v997_v26 = vadd.f32 %v996_v25, %v995_v23 }
 0x268   : > { %v733_v27 = vadd.f32 %v997_v26, %v921_v24 }
 0x26a   : > { %v922_v28 = vmul.f32 -1.442695, %v733_v27 }
 0x26c   : > { %1184 = vpow2.f32 %v922_v28 }
 0x279   : > { %v1185_v29 = vpop.eup %1184 }
 0x27a   : > { %v739_v30 = vadd.f32 1.0, %v1185_v29 }
 0x27c   : > { %1186 = vrcp.f32 %v739_v30 }
 0x289   : > { %v1187_v32 = vpop.eup %1186 }
 0x28a   : > { %v748_v33 = vmul.f32 %v1187_v32, %v747_v31 }
 0x28c   : > { %749 = vst [vmem:[%s1646_s23] sm:$0xff] %v748_v33 }
 0x28d   : > { %1333 = shalt.err (!%p1330_p7)
}
 0x28e   : > { %s1334_s0 = scalar_lea.hbm %s764_s20, 128  ;;  %s1338_s1 = scalar_lea.hbm %s1814_s11, 256 }
 0x28f   : > { %p1335_p8 = scmp.ne.s32.totalorder %s764_s20, %s1334_s0  ;;  %p1339_p0 = scmp.lt.s32.totalorder %s764_s20, %s1814_s11 }
 0x290   : > { %p1340_p4 = scmp.lt.s32.totalorder %s1338_s1, %s1334_s0 }
 0x291   : > { %p1336_p13 = pnand %p1335_p8, %p1815_p12 }
 0x292   : > { %p1341_p1 = por %p1340_p4, %p1339_p0 }
 0x293   : > { %p1337_p5 = pneg %p1336_p13 }
 0x295   : > { %p1342_p6 = pnand %p1341_p1, %p1337_p5 }
 0x297   : > { %1345 = shalt.err (!%p1342_p6)
}
 0x298   : > { %1086 = dma.vmem_to_hbm [thread:$0]  (%p1815_p12), %s767_s26, 128, %s764_s20, %s751_s25  }
 0x299 PF: > { %s1816_s2 = sld [smem:[#allocation18_spill]]  ;;  %p1819_p9 = scmp.ge.s32.totalorder %s1412_s10, 2 }
 0x29a   : > { %s1817_s17 = sld [smem:[#allocation19_spill]] }
 0x29f   : > { %s778_s21 = sand.u32 1, %s1816_s2  }
 0x2a0   : > { %p1818_p2 = scmp.ne.s32.totalorder %s1817_s17, 0  ;;  %s779_s12 = scalar_lea.sflag [#allocation5], %s778_s21 }
 0x2a2   : > { %p1106_p11 = pnand %p1819_p9, %p1818_p2 }
 0x2a4   : > { %p1107_p3 = pneg %p1106_p11 }
 0x2a6   : > { %1387 = dma.done.wait (%p1107_p3), %s779_s12, 128  }
 0x2a7   : > { %1389 = vsyncadd (%p1107_p3), %s779_s12, 4294967168  ;;  %s24_s10 = sadd.s32 1, %s1412_s10   ;;  %s1820_s27 = smov %s1396_s28 }
 0x2a8   : > { %p21_p10 = scmp.ge.s32.totalorder %s24_s10, 4   ;;  %s1821_s28 = smov %s1400_s29 }
 0x2a9   : > { %s1822_s29 = smov %s1604_s8  ;;  %s1823_s30 = smov %s1408_s9 }
 0x2aa   : > { %s1824_s9 = smov %s1826_s24  ;;  %23 = sbr.rel (!%p21_p10) target bundleno = 12 (0xc), region = 122 }
 0x2af   :  { %784 = vsyncpa [#allocation4], 1 }
 0x2b0   :  { %786 = vsyncpa [#allocation4 + $0x1], 1 }
 0x2b1   :  { %787 = vsyncpa [#allocation7], 1 }
 0x2b2   :  { %788 = vsyncpa [#allocation10], 1 }
 0x2b3   :  { %789 = vsyncpa [#allocation5], 1 }
 0x2b4   :  { %791 = vsyncpa [#allocation5 + $0x1], 1 }

</bundles_post_ra>
